<compile_context>
chip_gen: v7x
topology: tpu7x:2x2x1
jax: 0.10.0
libtpu: 0.0.40
codegen_flags: <defaults>
</compile_context>

<pallas_src>
import functools

import jax
import jax.numpy as jnp
from jax.experimental import pallas as pl
from jax.experimental.pallas import tpu as pltpu

_LANE = 128      # last-dim tile granularity
_SUBLANE = 8     # second-to-last-dim tile granularity

_HAS_BUFFERED = hasattr(pl, "Buffered")


def _round_up(x, m):
    return ((x + m - 1) // m) * m


def _resident_spec(block_shape, index_map):
    """BlockSpec for grid-invariant operands: single-buffered when supported."""
    if _HAS_BUFFERED:
        try:
            return pl.BlockSpec(block_shape, index_map,
                                pipeline_mode=pl.Buffered(1))
        except TypeError:
            pass
    return pl.BlockSpec(block_shape, index_map)


def _usable_vmem_bytes():
    """~3/4 of physical VMEM: ~48 MiB on 64 MiB parts (v7x), ~96 MiB on 128 MiB
    parts (v5e/v6e)."""
    cap = 64 << 20            # conservative fallback
    try:
        info = pltpu.get_tpu_info()
        cap = int(getattr(info, "vmem_capacity_bytes", cap))
    except Exception:
        pass
    return (cap * 3) // 4


def _alpha_rnn_fused_kernel(a_ref,        # SMEM (L,)               sigmoid(alpha) per layer
                            p0_ref,       # VMEM (Tc, Bs, Hp)       hoisted layer-0 projection chunk
                            w_ih_ref,     # VMEM (max(L-1,1),Hp,Hp) W_ih^T for layers >= 1
                            w_hh_ref,     # VMEM (L, Hp, Hp)        W_hh^T per layer
                            b_ref,        # VMEM (max(L-1,1),1,Hp)  b_ih + b_hh for layers >= 1
                            out_ref,      # VMEM (Tc, Bs, Hp)       last-layer outputs (time-major)
                            h_last_ref,   # VMEM (L, Bs, Hp)        final hidden state per layer
                            h_scratch,    # VMEM (L, Bs, Hp)        chunk-to-chunk hidden carry
                            xbuf,         # VMEM (Tc, Bs, Hp)       per-layer chunk activations
                            *, seq_len, needs_mask):
    tc = pl.program_id(1)                 # time-chunk index (recurrent axis)
    num_layers = h_scratch.shape[0]
    t_chunk, b_rows, h_pad = p0_ref.shape
    wdt = w_hh_ref.dtype                  # matmul operand dtype (f32 or bf16)

    # hidden=None in the PyTorch module -> zeros at the start of each batch shard.
    @pl.when(tc == 0)
    def _():
        h_scratch[...] = jnp.zeros_like(h_scratch)

    t0 = tc * t_chunk                     # global time of first step in this chunk

    def run_layer(layer, src_ref, dst_ref, w_hh):
        # Per-layer invariants hoisted out of the time loop.
        a = a_ref[layer]

        def step(t, h):
            pre = src_ref[t] + jnp.dot(h.astype(wdt), w_hh,
                                       preferred_element_type=jnp.float32)
            h_tilde = jnp.tanh(pre)
            if needs_mask:
                # Padded time steps (t0+t >= seq_len) leave h unchanged.
                a_eff = a * ((t0 + t) < seq_len).astype(jnp.float32)
            else:
                a_eff = a
            h_new = h + a_eff * (h_tilde - h)     # == a*h_tilde + (1-a)*h
            dst_ref[t] = h_new.astype(dst_ref.dtype)
            return h_new

        h_fin = jax.lax.fori_loop(0, t_chunk, step, h_scratch[layer],
                                  unroll=min(t_chunk, 8))
        h_scratch[layer] = h_fin

    # ---- layer 0: input projection already hoisted; only h @ W_hh^T serial.
    run_layer(0, p0_ref,
              out_ref if num_layers == 1 else xbuf,
              w_hh_ref[0])

    # ---- layers 1..L-1 (static Python unroll; weights resident in VMEM).
    for l in range(1, num_layers):
        # Whole-chunk input projection as ONE GEMM with M = t_chunk * b_rows,
        # written back in place (previous layer's chunk is dead afterwards).
        xv = xbuf[...].reshape(t_chunk * b_rows, h_pad).astype(wdt)
        proj = (jnp.dot(xv, w_ih_ref[l - 1],
                        preferred_element_type=jnp.float32) + b_ref[l - 1])
        xbuf[...] = proj.reshape(t_chunk, b_rows, h_pad)
        run_layer(l, xbuf,
                  out_ref if l == num_layers - 1 else xbuf,
                  w_hh_ref[l])

    # Final hidden state of every layer, written once at the end of the sweep.
    @pl.when(tc == pl.num_programs(1) - 1)
    def _():
        h_last_ref[...] = h_scratch[...].astype(h_last_ref.dtype)


def init_alpha_rnn_params(key, input_size, hidden_size, num_layers):
    """Deterministic parameter init (shapes follow the PyTorch module)."""
    params = []
    for i in range(num_layers):
        in_sz = input_size if i == 0 else hidden_size
        key, k1, k2, k3, k4, k5 = jax.random.split(key, 6)
        scale = 1.0 / jnp.sqrt(hidden_size)
        params.append(dict(
            W_ih=jax.random.uniform(k1, (hidden_size, in_sz), jnp.float32,
                                    -scale, scale),
            W_hh=jax.random.uniform(k2, (hidden_size, hidden_size), jnp.float32,
                                    -scale, scale),
            b_ih=jax.random.uniform(k3, (hidden_size,), jnp.float32, -scale, scale),
            b_hh=jax.random.uniform(k4, (hidden_size,), jnp.float32, -scale, scale),
            alpha=jax.random.uniform(k5, (1,), jnp.float32, -1.0, 1.0),
        ))
    return params


def prepare_alpha_rnn_params(params, weight_dtype=jnp.float32):
    """One-time packing: pre-transpose, pad H -> multiple of 128, stack layers,
    precompute sigmoid(alpha) and fold b_ih + b_hh. Done once, outside jit."""
    num_layers = len(params)
    hidden = params[0]["W_hh"].shape[0]
    in_size = params[0]["W_ih"].shape[1]
    h_pad = _round_up(hidden, _LANE)

    a = jax.nn.sigmoid(
        jnp.concatenate([p["alpha"].reshape(1) for p in params]).astype(jnp.float32))

    def pad_t(w):                       # (H, in) -> zero-padded (Hp, Hp) of W^T
        wt = w.T
        out = jnp.zeros((h_pad, h_pad), jnp.float32)
        return out.at[:wt.shape[0], :wt.shape[1]].set(wt)

    # Layer 0 (hoisted projection, runs in XLA as one flat GEMM): W_ih0^T padded
    # only on the output (lane) dim; bias = b_ih + b_hh folded.
    w_ih0_t = jnp.zeros((in_size, h_pad), jnp.float32).at[:, :hidden].set(
        params[0]["W_ih"].T)
    b0 = jnp.zeros((h_pad,), jnp.float32).at[:hidden].set(
        params[0]["b_ih"] + params[0]["b_hh"])

    w_hh_t = jnp.stack([pad_t(p["W_hh"]) for p in params]).astype(weight_dtype)

    if num_layers > 1:
        w_ih_t = jnp.stack([pad_t(p["W_ih"]) for p in params[1:]]).astype(weight_dtype)
        b_rest = jnp.stack([
            jnp.zeros((1, h_pad), jnp.float32).at[0, :hidden].set(p["b_ih"] + p["b_hh"])
            for p in params[1:]])
    else:  # keep shapes static; never read in the kernel when L == 1
        w_ih_t = jnp.zeros((1, h_pad, h_pad), weight_dtype)
        b_rest = jnp.zeros((1, 1, h_pad), jnp.float32)

    return dict(a=a, w_ih0_t=w_ih0_t, b0=b0,
                w_ih_t=w_ih_t, w_hh_t=w_hh_t, b=b_rest)


@functools.partial(jax.jit, static_argnames=("hidden_size", "t_chunk",
                                             "batch_shards", "time_major"))
def alpha_rnn_forward(x_btd, packed, *, hidden_size, t_chunk=32,
                      batch_shards=1, time_major=False):
    """Full AlphaRNN forward: (B, T, D) -> (outputs (B, T, H), [h_i (B, H)]).

    batch_shards: leading "parallel" grid axis (only worth >1 on v7x when each
    shard keeps >=128 padded rows). time_major=True skips the final transpose
    for consumers that accept (T, B, H)."""
    B, T, D = x_btd.shape
    H = hidden_size
    L = packed["w_hh_t"].shape[0]
    h_pad = packed["w_hh_t"].shape[1]
    lm1 = packed["w_ih_t"].shape[0]

    b_shard = _round_up(-(-B // batch_shards), _SUBLANE)   # rows per shard, %8 == 0
    b_pad = b_shard * batch_shards

    # Time chunking: pad T to a whole number of chunks (never degrade to tiny
    # divisor chunks); rebalance chunk size so padding is < one chunk.
    tc_sz = max(1, min(t_chunk, T))
    n_chunks = -(-T // tc_sz)
    tc_sz = -(-T // n_chunks)
    t_pad = n_chunks * tc_sz
    needs_mask = (t_pad != T)

    x_pad = jnp.pad(x_btd.astype(jnp.float32),
                    ((0, b_pad - B), (0, t_pad - T), (0, 0)))

    # Hoisted, time-independent layer-0 projection as one flat large-M GEMM,
    # produced directly time-major (clean contiguous-output GEMM for XLA).
    x_flat = jnp.transpose(x_pad, (1, 0, 2)).reshape(t_pad * b_pad, D)
    p0 = (jnp.dot(x_flat, packed["w_ih0_t"]) + packed["b0"]).reshape(
        t_pad, b_pad, h_pad)

    # VMEM budget: streamed blocks double-buffered, weights counted at 2x for
    # safety (they are requested single-buffered), capped at ~3/4 of chip VMEM.
    wbytes = jnp.dtype(packed["w_hh_t"].dtype).itemsize
    blk = tc_sz * b_shard * h_pad * 4
    est = (2 * blk + 2 * blk                              # p0 in + out blocks
           + 2 * (L + lm1) * h_pad * h_pad * wbytes       # W_hh^T, W_ih^T
           + 2 * lm1 * h_pad * 4                          # folded biases
           + 2 * L * b_shard * h_pad * 4                  # h_last output
           + L * b_shard * h_pad * 4                      # h scratch
           + blk                                          # xbuf scratch
           + (4 << 20))                                   # Mosaic headroom
    vmem_limit = int(min(max(est, 8 << 20), _usable_vmem_bytes()))

    kernel = functools.partial(_alpha_rnn_fused_kernel,
                               seq_len=T, needs_mask=needs_mask)

    out_tbh, h_last = pl.pallas_call(
        kernel,
        out_shape=(jax.ShapeDtypeStruct((t_pad, b_pad, h_pad), jnp.float32),
                   jax.ShapeDtypeStruct((L, b_pad, h_pad), jnp.float32)),
        grid=(batch_shards, n_chunks),
        in_specs=[
            pl.BlockSpec(memory_space=pltpu.MemorySpace.SMEM),                   # sigmoid(alpha)
            pl.BlockSpec((tc_sz, b_shard, h_pad), lambda bs, tc: (tc, bs, 0)),   # P0 chunk
            _resident_spec((lm1, h_pad, h_pad), lambda bs, tc: (0, 0, 0)),       # W_ih^T (l>=1)
            _resident_spec((L, h_pad, h_pad), lambda bs, tc: (0, 0, 0)),         # W_hh^T
            _resident_spec((lm1, 1, h_pad), lambda bs, tc: (0, 0, 0)),           # biases (l>=1)
        ],
        out_specs=(
            pl.BlockSpec((tc_sz, b_shard, h_pad), lambda bs, tc: (tc, bs, 0)),   # outputs
            pl.BlockSpec((L, b_shard, h_pad), lambda bs, tc: (0, bs, 0)),        # final hidden
        ),
        scratch_shapes=[
            pltpu.VMEM((L, b_shard, h_pad), jnp.float32),       # chunk-to-chunk hidden
            pltpu.VMEM((tc_sz, b_shard, h_pad), jnp.float32),   # per-layer chunk buffer
        ],
        compiler_params=pltpu.CompilerParams(
            dimension_semantics=("parallel", "arbitrary"),      # batch ||, time = recurrence
            vmem_limit_bytes=vmem_limit,
        ),
    )(packed["a"], p0, packed["w_ih_t"], packed["w_hh_t"], packed["b"])

    hidden = [h_last[l, :B, :H] for l in range(L)]
    if time_major:
        return out_tbh[:T, :B, :H], hidden
    outputs = jnp.transpose(out_tbh[:T, :B, :H], (1, 0, 2))     # back to (B, T, H)
    return outputs, hidden


def _reference_forward(x_btd, params):
    """Pure-JAX reference matching the PyTorch loop, for a sanity check."""
    B, T, _ = x_btd.shape
    H = params[0]["W_hh"].shape[0]
    hidden = [jnp.zeros((B, H), jnp.float32) for _ in params]
    outs = []
    for t in range(T):
        x = x_btd[:, t, :]
        for i, p in enumerate(params):
            a = jax.nn.sigmoid(p["alpha"][0])
            h_tilde = jnp.tanh(x @ p["W_ih"].T + p["b_ih"]
                               + hidden[i] @ p["W_hh"].T + p["b_hh"])
            hidden[i] = a * h_tilde + (1.0 - a) * hidden[i]
            x = hidden[i]
        outs.append(x[:, None, :])
    return jnp.concatenate(outs, axis=1), hidden


if __name__ == "__main__":
    B, T, D, H, L = 2, 8, 16, 32, 2

    key = jax.random.PRNGKey(0)
    key, kx = jax.random.split(key)
    x = jax.random.normal(kx, (B, T, D), jnp.float32)
    params = init_alpha_rnn_params(key, D, H, L)

    # One-time packing. weight_dtype=jnp.bfloat16 enables the native MXU path
    # (use a looser tolerance at long T); f32 here for a tight check.
    packed = prepare_alpha_rnn_params(params, weight_dtype=jnp.float32)

    ref_out, ref_hidden = _reference_forward(x, params)

    # Config 1: T divisible by the chunk -> multi-chunk path, no masking.
    out1, hid1 = alpha_rnn_forward(x, packed, hidden_size=H, t_chunk=4)
    out1 = jax.block_until_ready(out1)
    hid1 = [jax.block_until_ready(h) for h in hid1]

    # Config 2: chunk that does not divide T -> padded tail + masked updates.
    out2, hid2 = alpha_rnn_forward(x, packed, hidden_size=H, t_chunk=3)
    out2 = jax.block_until_ready(out2)
    hid2 = [jax.block_until_ready(h) for h in hid2]

    for out, hid in ((out1, hid1), (out2, hid2)):
        assert out.shape == (B, T, H)
        assert all(h.shape == (B, H) for h in hid)
        assert jnp.allclose(out, ref_out, atol=1e-4, rtol=1e-4)
        assert all(jnp.allclose(h, rh, atol=1e-4, rtol=1e-4)
                   for h, rh in zip(hid, ref_hidden))

    print("KERNEL_OK")
</pallas_src>

<mosaic_0001>
module attributes {stable_mosaic.version = 11 : i64} {
  func.func @_alpha_rnn_fused_kernel(%arg0: i32, %arg1: i32, %arg2: memref<2xf32, #tpu.memory_space<smem>>, %arg3: memref<4x8x128xf32, #tpu.memory_space<vmem>>, %arg4: memref<1x128x128xf32, #tpu.memory_space<vmem>>, %arg5: memref<2x128x128xf32, #tpu.memory_space<vmem>>, %arg6: memref<1x1x128xf32, #tpu.memory_space<vmem>>, %arg7: memref<4x8x128xf32, #tpu.memory_space<vmem>>, %arg8: memref<2x8x128xf32, #tpu.memory_space<vmem>>, %arg9: memref<2x8x128xf32, #tpu.memory_space<vmem>>, %arg10: memref<4x8x128xf32, #tpu.memory_space<vmem>>) attributes {dimension_semantics = [#tpu.dimension_semantics<parallel>, #tpu.dimension_semantics<arbitrary>], iteration_bounds = array<i64: 1, 2>, scalar_prefetch = 0 : i64, scratch_operands = 2 : i64, tpu.core_type = #tpu.core_type<tc>, window_params = [{transform_indices = @transform_0, window_bounds = array<i64: 2>}, {transform_indices = @transform_1, window_bounds = array<i64: 4, 8, 128>}, {pipeline_mode = #tpu.pipeline_mode<synchronous>, transform_indices = @transform_2, window_bounds = array<i64: 1, 128, 128>}, {pipeline_mode = #tpu.pipeline_mode<synchronous>, transform_indices = @transform_3, window_bounds = array<i64: 2, 128, 128>}, {pipeline_mode = #tpu.pipeline_mode<synchronous>, transform_indices = @transform_4, window_bounds = array<i64: 1, 1, 128>}, {transform_indices = @transform_5, window_bounds = array<i64: 4, 8, 128>}, {transform_indices = @transform_6, window_bounds = array<i64: 2, 8, 128>}]} {
    %c0_i32 = arith.constant 0 : i32
    %0 = arith.cmpi eq, %arg1, %c0_i32 : i32
    %1 = arith.extui %0 : i1 to i32
    %c0_i32_0 = arith.constant 0 : i32
    %2 = arith.cmpi ne, %1, %c0_i32_0 : i32
    scf.if %2 {
      %cst_79 = arith.constant 0.000000e+00 : f32
      %145 = vector.broadcast %cst_79 : f32 to vector<2x8x128xf32>
      %c0_80 = arith.constant 0 : index
      %c0_81 = arith.constant 0 : index
      %c0_82 = arith.constant 0 : index
      %146 = vector.load %arg9[%c0_80, %c0_81, %c0_82] : memref<2x8x128xf32, #tpu.memory_space<vmem>>, vector<2x8x128xf32>
      tpu.vector_store %arg9[%c0_80, %c0_81, %c0_82], %145 {strides = array<i32>} : memref<2x8x128xf32, #tpu.memory_space<vmem>>, vector<2x8x128xf32>,
    } else {
    }
    %c0 = arith.constant 0 : index
    %c0_1 = arith.constant 0 : index
    %c0_2 = arith.constant 0 : index
    %3 = vector.load %arg5[%c0, %c0_1, %c0_2] : memref<2x128x128xf32, #tpu.memory_space<vmem>>, vector<1x128x128xf32>
    %4 = vector.shape_cast %3 : vector<1x128x128xf32> to vector<128x128xf32>
    %c0_3 = arith.constant 0 : index
    %5 = memref.load %arg2[%c0_3] : memref<2xf32, #tpu.memory_space<smem>>
    %c0_4 = arith.constant 0 : index
    %c0_5 = arith.constant 0 : index
    %c0_6 = arith.constant 0 : index
    %6 = vector.load %arg9[%c0_4, %c0_5, %c0_6] : memref<2x8x128xf32, #tpu.memory_space<vmem>>, vector<1x8x128xf32>
    %7 = vector.shape_cast %6 : vector<1x8x128xf32> to vector<8x128xf32>
    %c0_i32_7 = arith.constant 0 : i32
    %8 = arith.index_cast %c0_i32_7 : i32 to index
    %c0_8 = arith.constant 0 : index
    %c0_9 = arith.constant 0 : index
    %9 = vector.load %arg3[%8, %c0_8, %c0_9] : memref<4x8x128xf32, #tpu.memory_space<vmem>>, vector<1x8x128xf32>
    %10 = vector.shape_cast %9 : vector<1x8x128xf32> to vector<8x128xf32>
    %cst = arith.constant dense<0.000000e+00> : vector<8x128xf32>
    %11 = tpu.matmul %7, %4, %cst {dimension_numbers = #tpu.dot_dimension_numbers<[1], [0], [0], [1], [0, 0, 1, 1], [], []>} : vector<8x128xf32>, vector<128x128xf32>, vector<8x128xf32> -> vector<8x128xf32>
    %12 = arith.addf %10, %11 : vector<8x128xf32>
    %13 = math.tanh %12 : vector<8x128xf32>
    %14 = arith.subf %13, %7 : vector<8x128xf32>
    %15 = vector.broadcast %5 : f32 to vector<8x128xf32>
    %16 = arith.mulf %15, %14 : vector<8x128xf32>
    %17 = arith.addf %7, %16 : vector<8x128xf32>
    %18 = arith.index_cast %c0_i32_7 : i32 to index
    %c0_10 = arith.constant 0 : index
    %c0_11 = arith.constant 0 : index
    %19 = vector.load %arg10[%18, %c0_10, %c0_11] : memref<4x8x128xf32, #tpu.memory_space<vmem>>, vector<1x8x128xf32>
    %20 = vector.shape_cast %19 : vector<1x8x128xf32> to vector<8x128xf32>
    %21 = vector.shape_cast %17 : vector<8x128xf32> to vector<1x8x128xf32>
    tpu.vector_store %arg10[%18, %c0_10, %c0_11], %21 {strides = array<i32>} : memref<4x8x128xf32, #tpu.memory_space<vmem>>, vector<1x8x128xf32>,
    %c1_i32 = arith.constant 1 : i32
    %22 = arith.index_cast %c1_i32 : i32 to index
    %c0_12 = arith.constant 0 : index
    %c0_13 = arith.constant 0 : index
    %23 = vector.load %arg3[%22, %c0_12, %c0_13] : memref<4x8x128xf32, #tpu.memory_space<vmem>>, vector<1x8x128xf32>
    %24 = vector.shape_cast %23 : vector<1x8x128xf32> to vector<8x128xf32>
    %cst_14 = arith.constant dense<0.000000e+00> : vector<8x128xf32>
    %25 = tpu.matmul %17, %4, %cst_14 {dimension_numbers = #tpu.dot_dimension_numbers<[1], [0], [0], [1], [0, 0, 1, 1], [], []>} : vector<8x128xf32>, vector<128x128xf32>, vector<8x128xf32> -> vector<8x128xf32>
    %26 = arith.addf %24, %25 : vector<8x128xf32>
    %27 = math.tanh %26 : vector<8x128xf32>
    %28 = arith.subf %27, %17 : vector<8x128xf32>
    %29 = vector.broadcast %5 : f32 to vector<8x128xf32>
    %30 = arith.mulf %29, %28 : vector<8x128xf32>
    %31 = arith.addf %17, %30 : vector<8x128xf32>
    %32 = arith.index_cast %c1_i32 : i32 to index
    %c0_15 = arith.constant 0 : index
    %c0_16 = arith.constant 0 : index
    %33 = vector.load %arg10[%32, %c0_15, %c0_16] : memref<4x8x128xf32, #tpu.memory_space<vmem>>, vector<1x8x128xf32>
    %34 = vector.shape_cast %33 : vector<1x8x128xf32> to vector<8x128xf32>
    %35 = vector.shape_cast %31 : vector<8x128xf32> to vector<1x8x128xf32>
    tpu.vector_store %arg10[%32, %c0_15, %c0_16], %35 {strides = array<i32>} : memref<4x8x128xf32, #tpu.memory_space<vmem>>, vector<1x8x128xf32>,
    %c2_i32 = arith.constant 2 : i32
    %36 = arith.index_cast %c2_i32 : i32 to index
    %c0_17 = arith.constant 0 : index
    %c0_18 = arith.constant 0 : index
    %37 = vector.load %arg3[%36, %c0_17, %c0_18] : memref<4x8x128xf32, #tpu.memory_space<vmem>>, vector<1x8x128xf32>
    %38 = vector.shape_cast %37 : vector<1x8x128xf32> to vector<8x128xf32>
    %cst_19 = arith.constant dense<0.000000e+00> : vector<8x128xf32>
    %39 = tpu.matmul %31, %4, %cst_19 {dimension_numbers = #tpu.dot_dimension_numbers<[1], [0], [0], [1], [0, 0, 1, 1], [], []>} : vector<8x128xf32>, vector<128x128xf32>, vector<8x128xf32> -> vector<8x128xf32>
    %40 = arith.addf %38, %39 : vector<8x128xf32>
    %41 = math.tanh %40 : vector<8x128xf32>
    %42 = arith.subf %41, %31 : vector<8x128xf32>
    %43 = vector.broadcast %5 : f32 to vector<8x128xf32>
    %44 = arith.mulf %43, %42 : vector<8x128xf32>
    %45 = arith.addf %31, %44 : vector<8x128xf32>
    %46 = arith.index_cast %c2_i32 : i32 to index
    %c0_20 = arith.constant 0 : index
    %c0_21 = arith.constant 0 : index
    %47 = vector.load %arg10[%46, %c0_20, %c0_21] : memref<4x8x128xf32, #tpu.memory_space<vmem>>, vector<1x8x128xf32>
    %48 = vector.shape_cast %47 : vector<1x8x128xf32> to vector<8x128xf32>
    %49 = vector.shape_cast %45 : vector<8x128xf32> to vector<1x8x128xf32>
    tpu.vector_store %arg10[%46, %c0_20, %c0_21], %49 {strides = array<i32>} : memref<4x8x128xf32, #tpu.memory_space<vmem>>, vector<1x8x128xf32>,
    %c3_i32 = arith.constant 3 : i32
    %50 = arith.index_cast %c3_i32 : i32 to index
    %c0_22 = arith.constant 0 : index
    %c0_23 = arith.constant 0 : index
    %51 = vector.load %arg3[%50, %c0_22, %c0_23] : memref<4x8x128xf32, #tpu.memory_space<vmem>>, vector<1x8x128xf32>
    %52 = vector.shape_cast %51 : vector<1x8x128xf32> to vector<8x128xf32>
    %cst_24 = arith.constant dense<0.000000e+00> : vector<8x128xf32>
    %53 = tpu.matmul %45, %4, %cst_24 {dimension_numbers = #tpu.dot_dimension_numbers<[1], [0], [0], [1], [0, 0, 1, 1], [], []>} : vector<8x128xf32>, vector<128x128xf32>, vector<8x128xf32> -> vector<8x128xf32>
    %54 = arith.addf %52, %53 : vector<8x128xf32>
    %55 = math.tanh %54 : vector<8x128xf32>
    %56 = arith.subf %55, %45 : vector<8x128xf32>
    %57 = vector.broadcast %5 : f32 to vector<8x128xf32>
    %58 = arith.mulf %57, %56 : vector<8x128xf32>
    %59 = arith.addf %45, %58 : vector<8x128xf32>
    %60 = arith.index_cast %c3_i32 : i32 to index
    %c0_25 = arith.constant 0 : index
    %c0_26 = arith.constant 0 : index
    %61 = vector.load %arg10[%60, %c0_25, %c0_26] : memref<4x8x128xf32, #tpu.memory_space<vmem>>, vector<1x8x128xf32>
    %62 = vector.shape_cast %61 : vector<1x8x128xf32> to vector<8x128xf32>
    %63 = vector.shape_cast %59 : vector<8x128xf32> to vector<1x8x128xf32>
    tpu.vector_store %arg10[%60, %c0_25, %c0_26], %63 {strides = array<i32>} : memref<4x8x128xf32, #tpu.memory_space<vmem>>, vector<1x8x128xf32>,
    %c4_i32 = arith.constant 4 : i32
    %c0_27 = arith.constant 0 : index
    %c0_28 = arith.constant 0 : index
    %c0_29 = arith.constant 0 : index
    %64 = vector.load %arg9[%c0_27, %c0_28, %c0_29] : memref<2x8x128xf32, #tpu.memory_space<vmem>>, vector<1x8x128xf32>
    %65 = vector.shape_cast %64 : vector<1x8x128xf32> to vector<8x128xf32>
    %66 = vector.shape_cast %59 : vector<8x128xf32> to vector<1x8x128xf32>
    tpu.vector_store %arg9[%c0_27, %c0_28, %c0_29], %66 {strides = array<i32>} : memref<2x8x128xf32, #tpu.memory_space<vmem>>, vector<1x8x128xf32>,
    %c0_30 = arith.constant 0 : index
    %c0_31 = arith.constant 0 : index
    %c0_32 = arith.constant 0 : index
    %67 = vector.load %arg10[%c0_30, %c0_31, %c0_32] : memref<4x8x128xf32, #tpu.memory_space<vmem>>, vector<4x8x128xf32>
    %68 = vector.shape_cast %67 : vector<4x8x128xf32> to vector<32x128xf32>
    %c0_33 = arith.constant 0 : index
    %c0_34 = arith.constant 0 : index
    %c0_35 = arith.constant 0 : index
    %69 = vector.load %arg4[%c0_33, %c0_34, %c0_35] : memref<1x128x128xf32, #tpu.memory_space<vmem>>, vector<1x128x128xf32>
    %70 = vector.shape_cast %69 : vector<1x128x128xf32> to vector<128x128xf32>
    %cst_36 = arith.constant dense<0.000000e+00> : vector<32x128xf32>
    %71 = tpu.matmul %68, %70, %cst_36 {dimension_numbers = #tpu.dot_dimension_numbers<[1], [0], [0], [1], [0, 0, 1, 1], [], []>} : vector<32x128xf32>, vector<128x128xf32>, vector<32x128xf32> -> vector<32x128xf32>
    %c0_37 = arith.constant 0 : index
    %c0_38 = arith.constant 0 : index
    %c0_39 = arith.constant 0 : index
    %72 = vector.load %arg6[%c0_37, %c0_38, %c0_39] : memref<1x1x128xf32, #tpu.memory_space<vmem>>, vector<1x1x128xf32>
    %73 = vector.shape_cast %72 : vector<1x1x128xf32> to vector<1x128xf32>
    %74 = vector.broadcast %73 : vector<1x128xf32> to vector<32x128xf32>
    %75 = arith.addf %71, %74 : vector<32x128xf32>
    %76 = vector.shape_cast %75 : vector<32x128xf32> to vector<4x8x128xf32>
    %c0_40 = arith.constant 0 : index
    %c0_41 = arith.constant 0 : index
    %c0_42 = arith.constant 0 : index
    %77 = vector.load %arg10[%c0_40, %c0_41, %c0_42] : memref<4x8x128xf32, #tpu.memory_space<vmem>>, vector<4x8x128xf32>
    tpu.vector_store %arg10[%c0_40, %c0_41, %c0_42], %76 {strides = array<i32>} : memref<4x8x128xf32, #tpu.memory_space<vmem>>, vector<4x8x128xf32>,
    %c1 = arith.constant 1 : index
    %c0_43 = arith.constant 0 : index
    %c0_44 = arith.constant 0 : index
    %78 = vector.load %arg5[%c1, %c0_43, %c0_44] : memref<2x128x128xf32, #tpu.memory_space<vmem>>, vector<1x128x128xf32>
    %79 = vector.shape_cast %78 : vector<1x128x128xf32> to vector<128x128xf32>
    %c1_45 = arith.constant 1 : index
    %80 = memref.load %arg2[%c1_45] : memref<2xf32, #tpu.memory_space<smem>>
    %c1_46 = arith.constant 1 : index
    %c0_47 = arith.constant 0 : index
    %c0_48 = arith.constant 0 : index
    %81 = vector.load %arg9[%c1_46, %c0_47, %c0_48] : memref<2x8x128xf32, #tpu.memory_space<vmem>>, vector<1x8x128xf32>
    %82 = vector.shape_cast %81 : vector<1x8x128xf32> to vector<8x128xf32>
    %c0_i32_49 = arith.constant 0 : i32
    %83 = arith.index_cast %c0_i32_49 : i32 to index
    %c0_50 = arith.constant 0 : index
    %c0_51 = arith.constant 0 : index
    %84 = vector.load %arg10[%83, %c0_50, %c0_51] : memref<4x8x128xf32, #tpu.memory_space<vmem>>, vector<1x8x128xf32>
    %85 = vector.shape_cast %84 : vector<1x8x128xf32> to vector<8x128xf32>
    %cst_52 = arith.constant dense<0.000000e+00> : vector<8x128xf32>
    %86 = tpu.matmul %82, %79, %cst_52 {dimension_numbers = #tpu.dot_dimension_numbers<[1], [0], [0], [1], [0, 0, 1, 1], [], []>} : vector<8x128xf32>, vector<128x128xf32>, vector<8x128xf32> -> vector<8x128xf32>
    %87 = arith.addf %85, %86 : vector<8x128xf32>
    %88 = math.tanh %87 : vector<8x128xf32>
    %89 = arith.subf %88, %82 : vector<8x128xf32>
    %90 = vector.broadcast %80 : f32 to vector<8x128xf32>
    %91 = arith.mulf %90, %89 : vector<8x128xf32>
    %92 = arith.addf %82, %91 : vector<8x128xf32>
    %93 = arith.index_cast %c0_i32_49 : i32 to index
    %c0_53 = arith.constant 0 : index
    %c0_54 = arith.constant 0 : index
    %94 = vector.load %arg7[%93, %c0_53, %c0_54] : memref<4x8x128xf32, #tpu.memory_space<vmem>>, vector<1x8x128xf32>
    %95 = vector.shape_cast %94 : vector<1x8x128xf32> to vector<8x128xf32>
    %96 = vector.shape_cast %92 : vector<8x128xf32> to vector<1x8x128xf32>
    tpu.vector_store %arg7[%93, %c0_53, %c0_54], %96 {strides = array<i32>} : memref<4x8x128xf32, #tpu.memory_space<vmem>>, vector<1x8x128xf32>,
    %c1_i32_55 = arith.constant 1 : i32
    %97 = arith.index_cast %c1_i32_55 : i32 to index
    %c0_56 = arith.constant 0 : index
    %c0_57 = arith.constant 0 : index
    %98 = vector.load %arg10[%97, %c0_56, %c0_57] : memref<4x8x128xf32, #tpu.memory_space<vmem>>, vector<1x8x128xf32>
    %99 = vector.shape_cast %98 : vector<1x8x128xf32> to vector<8x128xf32>
    %cst_58 = arith.constant dense<0.000000e+00> : vector<8x128xf32>
    %100 = tpu.matmul %92, %79, %cst_58 {dimension_numbers = #tpu.dot_dimension_numbers<[1], [0], [0], [1], [0, 0, 1, 1], [], []>} : vector<8x128xf32>, vector<128x128xf32>, vector<8x128xf32> -> vector<8x128xf32>
    %101 = arith.addf %99, %100 : vector<8x128xf32>
    %102 = math.tanh %101 : vector<8x128xf32>
    %103 = arith.subf %102, %92 : vector<8x128xf32>
    %104 = vector.broadcast %80 : f32 to vector<8x128xf32>
    %105 = arith.mulf %104, %103 : vector<8x128xf32>
    %106 = arith.addf %92, %105 : vector<8x128xf32>
    %107 = arith.index_cast %c1_i32_55 : i32 to index
    %c0_59 = arith.constant 0 : index
    %c0_60 = arith.constant 0 : index
    %108 = vector.load %arg7[%107, %c0_59, %c0_60] : memref<4x8x128xf32, #tpu.memory_space<vmem>>, vector<1x8x128xf32>
    %109 = vector.shape_cast %108 : vector<1x8x128xf32> to vector<8x128xf32>
    %110 = vector.shape_cast %106 : vector<8x128xf32> to vector<1x8x128xf32>
    tpu.vector_store %arg7[%107, %c0_59, %c0_60], %110 {strides = array<i32>} : memref<4x8x128xf32, #tpu.memory_space<vmem>>, vector<1x8x128xf32>,
    %c2_i32_61 = arith.constant 2 : i32
    %111 = arith.index_cast %c2_i32_61 : i32 to index
    %c0_62 = arith.constant 0 : index
    %c0_63 = arith.constant 0 : index
    %112 = vector.load %arg10[%111, %c0_62, %c0_63] : memref<4x8x128xf32, #tpu.memory_space<vmem>>, vector<1x8x128xf32>
    %113 = vector.shape_cast %112 : vector<1x8x128xf32> to vector<8x128xf32>
    %cst_64 = arith.constant dense<0.000000e+00> : vector<8x128xf32>
    %114 = tpu.matmul %106, %79, %cst_64 {dimension_numbers = #tpu.dot_dimension_numbers<[1], [0], [0], [1], [0, 0, 1, 1], [], []>} : vector<8x128xf32>, vector<128x128xf32>, vector<8x128xf32> -> vector<8x128xf32>
    %115 = arith.addf %113, %114 : vector<8x128xf32>
    %116 = math.tanh %115 : vector<8x128xf32>
    %117 = arith.subf %116, %106 : vector<8x128xf32>
    %118 = vector.broadcast %80 : f32 to vector<8x128xf32>
    %119 = arith.mulf %118, %117 : vector<8x128xf32>
    %120 = arith.addf %106, %119 : vector<8x128xf32>
    %121 = arith.index_cast %c2_i32_61 : i32 to index
    %c0_65 = arith.constant 0 : index
    %c0_66 = arith.constant 0 : index
    %122 = vector.load %arg7[%121, %c0_65, %c0_66] : memref<4x8x128xf32, #tpu.memory_space<vmem>>, vector<1x8x128xf32>
    %123 = vector.shape_cast %122 : vector<1x8x128xf32> to vector<8x128xf32>
    %124 = vector.shape_cast %120 : vector<8x128xf32> to vector<1x8x128xf32>
    tpu.vector_store %arg7[%121, %c0_65, %c0_66], %124 {strides = array<i32>} : memref<4x8x128xf32, #tpu.memory_space<vmem>>, vector<1x8x128xf32>,
    %c3_i32_67 = arith.constant 3 : i32
    %125 = arith.index_cast %c3_i32_67 : i32 to index
    %c0_68 = arith.constant 0 : index
    %c0_69 = arith.constant 0 : index
    %126 = vector.load %arg10[%125, %c0_68, %c0_69] : memref<4x8x128xf32, #tpu.memory_space<vmem>>, vector<1x8x128xf32>
    %127 = vector.shape_cast %126 : vector<1x8x128xf32> to vector<8x128xf32>
    %cst_70 = arith.constant dense<0.000000e+00> : vector<8x128xf32>
    %128 = tpu.matmul %120, %79, %cst_70 {dimension_numbers = #tpu.dot_dimension_numbers<[1], [0], [0], [1], [0, 0, 1, 1], [], []>} : vector<8x128xf32>, vector<128x128xf32>, vector<8x128xf32> -> vector<8x128xf32>
    %129 = arith.addf %127, %128 : vector<8x128xf32>
    %130 = math.tanh %129 : vector<8x128xf32>
    %131 = arith.subf %130, %120 : vector<8x128xf32>
    %132 = vector.broadcast %80 : f32 to vector<8x128xf32>
    %133 = arith.mulf %132, %131 : vector<8x128xf32>
    %134 = arith.addf %120, %133 : vector<8x128xf32>
    %135 = arith.index_cast %c3_i32_67 : i32 to index
    %c0_71 = arith.constant 0 : index
    %c0_72 = arith.constant 0 : index
    %136 = vector.load %arg7[%135, %c0_71, %c0_72] : memref<4x8x128xf32, #tpu.memory_space<vmem>>, vector<1x8x128xf32>
    %137 = vector.shape_cast %136 : vector<1x8x128xf32> to vector<8x128xf32>
    %138 = vector.shape_cast %134 : vector<8x128xf32> to vector<1x8x128xf32>
    tpu.vector_store %arg7[%135, %c0_71, %c0_72], %138 {strides = array<i32>} : memref<4x8x128xf32, #tpu.memory_space<vmem>>, vector<1x8x128xf32>,
    %c4_i32_73 = arith.constant 4 : i32
    %c1_74 = arith.constant 1 : index
    %c0_75 = arith.constant 0 : index
    %c0_76 = arith.constant 0 : index
    %139 = vector.load %arg9[%c1_74, %c0_75, %c0_76] : memref<2x8x128xf32, #tpu.memory_space<vmem>>, vector<1x8x128xf32>
    %140 = vector.shape_cast %139 : vector<1x8x128xf32> to vector<8x128xf32>
    %141 = vector.shape_cast %134 : vector<8x128xf32> to vector<1x8x128xf32>
    tpu.vector_store %arg9[%c1_74, %c0_75, %c0_76], %141 {strides = array<i32>} : memref<2x8x128xf32, #tpu.memory_space<vmem>>, vector<1x8x128xf32>,
    %c1_i32_77 = arith.constant 1 : i32
    %142 = arith.cmpi eq, %arg1, %c1_i32_77 : i32
    %143 = arith.extui %142 : i1 to i32
    %c0_i32_78 = arith.constant 0 : i32
    %144 = arith.cmpi ne, %143, %c0_i32_78 : i32
    scf.if %144 {
      %c0_79 = arith.constant 0 : index
      %c0_80 = arith.constant 0 : index
      %c0_81 = arith.constant 0 : index
      %145 = vector.load %arg9[%c0_79, %c0_80, %c0_81] : memref<2x8x128xf32, #tpu.memory_space<vmem>>, vector<2x8x128xf32>
      %c0_82 = arith.constant 0 : index
      %c0_83 = arith.constant 0 : index
      %c0_84 = arith.constant 0 : index
      %146 = vector.load %arg8[%c0_82, %c0_83, %c0_84] : memref<2x8x128xf32, #tpu.memory_space<vmem>>, vector<2x8x128xf32>
      tpu.vector_store %arg8[%c0_82, %c0_83, %c0_84], %145 {strides = array<i32>} : memref<2x8x128xf32, #tpu.memory_space<vmem>>, vector<2x8x128xf32>,
    } else {
    }
    return
  }
  func.func @transform_0(%arg0: i32, %arg1: i32) -> i32 {
    %c0_i32 = arith.constant 0 : i32
    %c0_i32_0 = arith.constant 0 : i32
    return %c0_i32 : i32
  }
  func.func @transform_1(%arg0: i32, %arg1: i32) -> (i32, i32, i32) {
    %c0_i32 = arith.constant 0 : i32
    %c0_i32_0 = arith.constant 0 : i32
    return %arg1, %arg0, %c0_i32 : i32, i32, i32
  }
  func.func @transform_2(%arg0: i32, %arg1: i32) -> (i32, i32, i32) {
    %c0_i32 = arith.constant 0 : i32
    %c0_i32_0 = arith.constant 0 : i32
    %c0_i32_1 = arith.constant 0 : i32
    %c0_i32_2 = arith.constant 0 : i32
    return %c0_i32, %c0_i32_0, %c0_i32_1 : i32, i32, i32
  }
  func.func @transform_3(%arg0: i32, %arg1: i32) -> (i32, i32, i32) {
    %c0_i32 = arith.constant 0 : i32
    %c0_i32_0 = arith.constant 0 : i32
    %c0_i32_1 = arith.constant 0 : i32
    %c0_i32_2 = arith.constant 0 : i32
    return %c0_i32, %c0_i32_0, %c0_i32_1 : i32, i32, i32
  }
  func.func @transform_4(%arg0: i32, %arg1: i32) -> (i32, i32, i32) {
    %c0_i32 = arith.constant 0 : i32
    %c0_i32_0 = arith.constant 0 : i32
    %c0_i32_1 = arith.constant 0 : i32
    %c0_i32_2 = arith.constant 0 : i32
    return %c0_i32, %c0_i32_0, %c0_i32_1 : i32, i32, i32
  }
  func.func @transform_5(%arg0: i32, %arg1: i32) -> (i32, i32, i32) {
    %c0_i32 = arith.constant 0 : i32
    %c0_i32_0 = arith.constant 0 : i32
    return %arg1, %arg0, %c0_i32 : i32, i32, i32
  }
  func.func @transform_6(%arg0: i32, %arg1: i32) -> (i32, i32, i32) {
    %c0_i32 = arith.constant 0 : i32
    %c0_i32_0 = arith.constant 0 : i32
    %c0_i32_1 = arith.constant 0 : i32
    return %c0_i32, %arg0, %c0_i32_0 : i32, i32, i32
  }
}

</mosaic_0001>

<bundles_post_ra>
// kernel: alpha_rnn_forward.1
= control target key start
LH: loop header
LB: loop body
LE: loop exit
PB: predicated region body
PF: predicated region fallthrough
CT: control target
= control target key end

     0   :  { %12 = vsyncpa [#allocation6], 0  ;;  %s2506_s0 = inlined_call_operand.vmem [shape: f32[2], index: 0, kind: input, shape index: {}]   ;;  %s2507_s1 = inlined_call_operand.vmem [shape: f32[8,8,128], index: 1, kind: input, shape index: {}]   ;;  %s2508_s2 = inlined_call_operand.vmem [shape: f32[1,128,128], index: 2, kind: input, shape index: {}]   ;;  %s2509_s3 = inlined_call_operand.hbm [shape: f32[2,128,128], index: 3, kind: input, shape index: {}]   ;;  %s2510_s4 = inlined_call_operand.vmem [shape: f32[1,1,128], index: 4, kind: input, shape index: {}]   ;;  %s2511_s5 = inlined_call_operand.vmem [shape: f32[8,8,128], index: 5, kind: output, shape index: {0}]   ;;  %s2512_s6 = inlined_call_operand.vmem [shape: f32[2,8,128], index: 6, kind: output, shape index: {1}]  }
   0x1   :  { %13 = vsyncpa [#allocation5], 0  ;;  %s2162_s21 = smov 0   ;;  %s2164_s22 = smov 0  }
   0x2   :  { %s2166_s23 = smov 0  }
   0x3 LB: > { %s1253_s24 = sadd.s32 4294967295, %s2117_s23   ;;  %s28_s25 = sadd.s32 1, %s2113_s22  ;;  %s2117_s23 = sphi %s2166_s23, %s19_s23   ;;  %s2113_s22 = sphi %s2164_s22, %s2517_s22   ;;  %s2109_s21 = sphi %s2162_s21, %s2516_s21  }
   0x4   : > { %p29_p0 = scmp.ge.s32.totalorder %s28_s25, 2  ;;  %p1255_p1 = scmp.ge.s32.totalorder %s2117_s23, 1 }
   0x5   : > { %p202_p2 = scmp.lt.s32.totalorder %s2117_s23, 3  ;;  %p2187_p4 = scmp.eq.s32.totalorder %s1253_s24, 0 }
   0x6   : > { %s2519_s25 = smov (%p29_p0, %s28_s25), 0  ;;  %s215_s30 = sshll.u32 %s2506_s0, 4  ;;  %s216_s30 = int_to_ptr.vmem [resolvable:$true] %s215_s30 }
   0x7   : > { %p2183_p3 = pnand %p1255_p1, %p202_p2  ;;  %s2119_s8 = smov [#allocation7]  }
   0x8   : > { %s228_s9 = sshll.u32 %s2119_s8, 4  ;;  %s2044_s10 = scalar_lea.vmem %s216_s30, 16  ;;  %s2202_s9 = int_to_ptr.vmem [resolvable:$true] %s228_s9 }
   0x9   : > { %p1985_p5 = pneg %p2183_p3  ;;  %p2045_p7 = scmp.ne.s32.totalorder %s216_s30, %s2044_s10 }
   0xa   : > { %p2052_p11 = scmp.lt.s32.totalorder %s216_s30, %s216_s30  ;;  %p2053_p12 = scmp.lt.s32.totalorder %s2044_s10, %s2044_s10 }
   0xb   : > { %p2198_p6 = pnand %p2187_p4, %p1985_p5 }
   0xc   : > { %p2054_p13 = por %p2053_p12, %p2052_p11 }
   0xd   : > { %p2046_p8 = pneg %p2198_p6 }
   0xf   : > { %p2047_p9 = pnand %p2046_p8, %p2045_p7 }
  0x11   : > { %p2048_p10 = pneg %p2047_p9 }
  0x13   : > { %p2055_p0 = pnand %p2054_p13, %p2048_p10 }
  0x15   : > { %2058 = shalt.err (!%p2055_p0)
}
  0x16   : > { %s2120_s11 = smov [#allocation4]   ;;  %s2059_s14 = scalar_lea.hbm %s2509_s3, 4096 }
  0x17   : > { %1988 = dma.vmem_to_smem (!%p2198_p6), %s216_s30, 16, %s2120_s11, [#allocation6]  }
  0x18   : > { %p2060_p1 = scmp.ne.s32.totalorder %s2509_s3, %s2059_s14  ;;  %p2066_p7 = scmp.lt.u32.totalorder %s2059_s14, %s2509_s3 }
  0x1a   : > { %p2062_p2 = pnand %p2060_p1, %p2046_p8 }
  0x1c   : > { %p2063_p5 = pneg %p2062_p2 }
  0x1e   : > { %p2068_p9 = pnand %p2066_p7, %p2063_p5 }
  0x20   : > { %2071 = shalt.err (!%p2068_p9)
}
  0x21   : > { %s2072_s19 = scalar_lea.vmem %s2202_s9, 4096  ;;  %p2080_p13 = scmp.lt.s32.totalorder %s2202_s9, %s2202_s9 }
  0x22   : > { %p2073_p10 = scmp.ne.s32.totalorder %s2202_s9, %s2072_s19  ;;  %p2081_p0 = scmp.lt.s32.totalorder %s2072_s19, %s2072_s19 }
  0x24   : > { %p2075_p11 = pnand %p2073_p10, %p2046_p8  ;;  %p2082_p1 = por %p2081_p0, %p2080_p13 }
  0x26   : > { %p2076_p12 = pneg %p2075_p11 }
  0x28   : > { %p2083_p2 = pnand %p2082_p1, %p2076_p12 }
  0x2a   : > { %2086 = shalt.err (!%p2083_p2)
}
  0x2b   : > { %s2121_s20 = smov 128   ;;  %s2122_s24 = smov 8  }
  0x2c   : > { %1991 = dma.hbm_to_vmem [thread:$0]  (!%p2198_p6), %s2509_s3, 4096, %s2202_s9, [#allocation5], %s2121_s20, %s2121_s20, %s2122_s24  }
  0x2d   : > { %259 = sbr.rel (%p2183_p3) target bundleno = 1758 (0x6de), region = 40 }
  0x34   : > { %2100 = dma.done.wait (%p2187_p4), [#allocation6], 16  }
  0x35   : > { %2102 = vsyncadd (%p2187_p4), [#allocation6], 4294967280 }
  0x36   : > { %2104 = dma.done.wait (%p2187_p4), [#allocation5], 4096  }
  0x37   : > { %2106 = vsyncadd (%p2187_p4), [#allocation5], 4294963200 }
  0x38   : > { %269 = sfence }
  0x39   : > { %s1262_s30 = sshll.u32 %s2109_s21, 2  ;;  %p1266_p3 = scmp.ne.s32.totalorder %s2109_s21, 0 }
  0x3a   : > { %p305_p8 = scmp.lt.s32.totalorder %s1262_s30, 7  ;;  %v2123_v0 = vmov (!%p1266_p3), 0.0  }
  0x3b   : > { %329 = sbr.rel (%p1266_p3) target bundleno = 66 (0x42), region = 52  ;;  %330 = vst [vmem:[#allocation2] sm:$0xff] (!%p1266_p3), %v2123_v0  ;;  %331 = vst [vmem:[#allocation2 + $0x8] sm:$0xff] (!%p1266_p3), %v2123_v0 }
  0x3c   : > { %s2521_s30 = smov (!%p305_p8, %s1262_s30), 7 }
  0x3d   : > { %s1263_s7 = sshll.u32 %s2521_s30, 3 }
  0x3e   : > { %s2250_s9 = scalar_lea.vmem %s2507_s1, %s1263_s7  ;;  %s2255_s12 = scalar_lea.vmem %s2511_s5, %s1263_s7 }
  0x42 PF: > { %v332_v1 = vld [vmem:[#allocation7] sm:$0xff]  ;;  %v333_v2 = vld [vmem:[#allocation7 + $0x8] sm:$0xff]  ;;  %v334_v3 = vld [vmem:[#allocation7 + $0x10] sm:$0xff]  ;;  %v2124_v4 = vmov 0.0|0.0   ;;  %vm2125_vm0 = vmmov 0   ;;  %v2126_v7 = vmov 0.0  }
  0x43   : > { %1753 = vmatprep.subr.bf16.mxu0 %v2124_v4  ;;  %v2259_v5 = vpack.c.bf16 %v333_v2, %v332_v1  ;;  %v335_v6 = vld [vmem:[#allocation7 + $0x18] sm:$0xff]  ;;  %1467 = vmatprep.mubr.msk.f32.mxu0 %vm2125_vm0, %v2126_v7  ;;  %v336_v9 = vld [vmem:[#allocation7 + $0x20] sm:$0xff]  ;;  %v337_v10 = vld [vmem:[#allocation7 + $0x28] sm:$0xff]  ;;  %s348_s27 = sld [smem:[#allocation4]]  ;;  %p1275_p4 = scmp.ne.s32.totalorder %s2109_s21, 1 }
  0x44   : > { %1777 = vmatprep.subr.bf16.mxu1 %v2124_v4  ;;  %1502 = vmatprep.mubr.msk.f32.mxu1 %vm2125_vm0, %v2126_v7  ;;  %v2267_v8 = vpack.c.bf16 %v335_v6, %v334_v3  ;;  %v2273_v11 = vpack.c.bf16 %v337_v10, %v336_v9  ;;  %v338_v12 = vld [vmem:[#allocation7 + $0x30] sm:$0xff]  ;;  %v339_v13 = vld [vmem:[#allocation7 + $0x38] sm:$0xff]  ;;  %v340_v15 = vld [vmem:[#allocation7 + $0x40] sm:$0xff] }
  0x45   : > { %1755 = vmatpush3.bf16.msra.mxu0 %v2259_v5  ;;  %1779 = vmatpush3.bf16.msra.mxu1 %v2259_v5  ;;  %v2279_v14 = vpack.c.bf16 %v339_v13, %v338_v12  ;;  %v341_v16 = vld [vmem:[#allocation7 + $0x48] sm:$0xff]  ;;  %v342_v18 = vld [vmem:[#allocation7 + $0x50] sm:$0xff]  ;;  %v343_v19 = vld [vmem:[#allocation7 + $0x58] sm:$0xff] }
  0x46   : > { %1756 = vmatprep.subr.bf16.mxu0 %v2124_v4  ;;  %1780 = vmatprep.subr.bf16.mxu1 %v2124_v4  ;;  %v2285_v17 = vpack.c.bf16 %v341_v16, %v340_v15  ;;  %v1769_v20 = vpack.c.bf16 %v343_v19, %v342_v18  ;;  %v344_v21 = vld [vmem:[#allocation7 + $0x60] sm:$0xff]  ;;  %v345_v22 = vld [vmem:[#allocation7 + $0x68] sm:$0xff]  ;;  %v346_v24 = vld [vmem:[#allocation7 + $0x70] sm:$0xff] }
  0x47   : > { %v1772_v23 = vpack.c.bf16 %v345_v22, %v344_v21  ;;  %v347_v25 = vld [vmem:[#allocation7 + $0x78] sm:$0xff]  ;;  %v349_v27 = vld [vmem:[#allocation2] sm:$0xff]  ;;  %v350_v28 = vld [vmem:[%s2250_s9] sm:$0xff] }
  0x48   : > { %v1775_v26 = vpack.c.bf16 %v347_v25, %v346_v24  ;;  %v670_v37 = vld [vmem:[%s2508_s2] sm:$0xff]  ;;  %v671_v38 = vld [vmem:[%s2508_s2 + $0x8] sm:$0xff]  ;;  %v672_v46 = vld [vmem:[%s2508_s2 + $0x10] sm:$0xff] }
  0x49   : > { %1758 = vmatpush3.bf16.msra.mxu0 %v2267_v8  ;;  %1782 = vmatpush3.bf16.msra.mxu1 %v2267_v8  ;;  %v2315_v33 = vstv %s348_s27  ;;  %v1849_v39 = vpack.c.bf16 %v671_v38, %v670_v37  ;;  %v1267_v40 = vld [vmem:[%s2250_s9 + $0x8] sm:$0xff]  ;;  %v673_v47 = vld [vmem:[%s2508_s2 + $0x18] sm:$0xff]  ;;  %v674_v51 = vld [vmem:[%s2508_s2 + $0x20] sm:$0xff] }
  0x4a   : > { %1759 = vmatprep.subr.bf16.mxu0 %v2124_v4  ;;  %1783 = vmatprep.subr.bf16.mxu1 %v2124_v4  ;;  %v1853_v50 = vpack.c.bf16 %v673_v47, %v672_v46  ;;  %v675_v52 = vld [vmem:[%s2508_s2 + $0x28] sm:$0xff]  ;;  %v676_v54 = vld [vmem:[%s2508_s2 + $0x30] sm:$0xff]  ;;  %v677_v55 = vld [vmem:[%s2508_s2 + $0x38] sm:$0xff] }
  0x4b   : > { %v1857_v53 = vpack.c.bf16 %v675_v52, %v674_v51  ;;  %v1861_v56 = vpack.c.bf16 %v677_v55, %v676_v54  ;;  %v678_v57 = vld [vmem:[%s2508_s2 + $0x40] sm:$0xff]  ;;  %v679_v58 = vld [vmem:[%s2508_s2 + $0x48] sm:$0xff]  ;;  %v680_v60 = vld [vmem:[%s2508_s2 + $0x50] sm:$0xff] }
  0x4c   : > { %v1865_v59 = vpack.c.bf16 %v679_v58, %v678_v57  ;;  %v681_v61 = vld [vmem:[%s2508_s2 + $0x58] sm:$0xff]  ;;  %v682_v63 = vld [vmem:[%s2508_s2 + $0x60] sm:$0xff]  ;;  %v683_v0 = vld [vmem:[%s2508_s2 + $0x68] sm:$0xff] }
  0x4d   : > { %1761 = vmatpush3.bf16.msra.mxu0 %v2273_v11  ;;  %1785 = vmatpush3.bf16.msra.mxu1 %v2273_v11  ;;  %v1869_v62 = vpack.c.bf16 %v681_v61, %v680_v60  ;;  %v1873_v1 = vpack.c.bf16 %v683_v0, %v682_v63  ;;  %v684_v2 = vld [vmem:[%s2508_s2 + $0x70] sm:$0xff]  ;;  %v685_v3 = vld [vmem:[%s2508_s2 + $0x78] sm:$0xff]  ;;  %v783_v6 = vld [vmem:[#allocation7 + $0x80] sm:$0xff] }
  0x4e   : > { %1762 = vmatprep.subr.bf16.mxu0 %v2124_v4  ;;  %1786 = vmatprep.subr.bf16.mxu1 %v2124_v4  ;;  %v785_v10 = vld [vmem:[#allocation7 + $0x90] sm:$0xff]  ;;  %v787_v13 = vld [vmem:[#allocation7 + $0xa0] sm:$0xff] }
  0x4f   : > { %v789_v16 = vld [vmem:[#allocation7 + $0xb0] sm:$0xff]  ;;  %v791_v19 = vld [vmem:[#allocation7 + $0xc0] sm:$0xff] }
  0x50   : > { %v793_v22 = vld [vmem:[#allocation7 + $0xd0] sm:$0xff]  ;;  %v795_v25 = vld [vmem:[#allocation7 + $0xe0] sm:$0xff] }
  0x51   : > { %1764 = vmatpush3.bf16.msra.mxu0 %v2279_v14  ;;  %1788 = vmatpush3.bf16.msra.mxu1 %v2279_v14  ;;  %v1270_v51 = vld [vmem:[%s2510_s4] ss:$0 sm:$0xff] }
  0x52   : > { %1765 = vmatprep.subr.bf16.mxu0 %v2124_v4  ;;  %1789 = vmatprep.subr.bf16.mxu1 %v2124_v4 }
  0x55   : > { %1767 = vmatpush3.bf16.msra.mxu0 %v2285_v17  ;;  %1791 = vmatpush3.bf16.msra.mxu1 %v2285_v17 }
  0x56   : > { %1768 = vmatprep.subr.bf16.mxu0 %v2124_v4  ;;  %1792 = vmatprep.subr.bf16.mxu1 %v2124_v4 }
  0x59   : > { %1770 = vmatpush3.bf16.msra.mxu0 %v1769_v20  ;;  %1794 = vmatpush3.bf16.msra.mxu1 %v1769_v20 }
  0x5a   : > { %1771 = vmatprep.subr.bf16.mxu0 %v2124_v4  ;;  %1795 = vmatprep.subr.bf16.mxu1 %v2124_v4 }
  0x5d   : > { %1773 = vmatpush3.bf16.msra.mxu0 %v1772_v23  ;;  %1797 = vmatpush3.bf16.msra.mxu1 %v1772_v23 }
  0x5e   : > { %1774 = vmatprep.subr.bf16.mxu0 %v2124_v4  ;;  %1798 = vmatprep.subr.bf16.mxu1 %v2124_v4 }
  0x61   : > { %1776 = vmatpush3.bf16.msra.mxu0 %v1775_v26  ;;  %1800 = vmatpush3.bf16.msra.mxu1 %v1775_v26 }
  0x62   : > { %1801 = vmatprep.subr.bf16.mxu0 %v2124_v4  ;;  %1825 = vmatprep.subr.bf16.mxu1 %v2124_v4 }
  0x64   : > { %1468 = vmatmul.mubr.f32.vlgmr.msra.gmra.mrb[0].mxu0 %v349_v27 }
  0x65   : > { %1803 = vmatpush3.bf16.msra.mxu0 %v2259_v5  ;;  %1537 = vmatprep.mubr.msk.f32.mxu0 %vm2125_vm0, %v2126_v7 }
  0x66   : > { %1804 = vmatprep.subr.bf16.mxu0 %v2124_v4 }
  0x69   : > { %1806 = vmatpush3.bf16.msra.mxu0 %v2267_v8 }
  0x6a   : > { %1807 = vmatprep.subr.bf16.mxu0 %v2124_v4 }
  0x6d   : > { %1809 = vmatpush3.bf16.msra.mxu0 %v2273_v11 }
  0x6e   : > { %1810 = vmatprep.subr.bf16.mxu0 %v2124_v4 }
  0x71   : > { %1812 = vmatpush3.bf16.msra.mxu0 %v2279_v14 }
  0x72   : > { %1813 = vmatprep.subr.bf16.mxu0 %v2124_v4 }
  0x75   : > { %1815 = vmatpush3.bf16.msra.mxu0 %v2285_v17 }
  0x76   : > { %1816 = vmatprep.subr.bf16.mxu0 %v2124_v4 }
  0x79   : > { %1818 = vmatpush3.bf16.msra.mxu0 %v1769_v20 }
  0x7a   : > { %1819 = vmatprep.subr.bf16.mxu0 %v2124_v4 }
  0x7d   : > { %1821 = vmatpush3.bf16.msra.mxu0 %v1772_v23 }
  0x7e   : > { %1822 = vmatprep.subr.bf16.mxu0 %v2124_v4 }
  0x81   : > { %1824 = vmatpush3.bf16.msra.mxu0 %v1775_v26 }
  0x82   : > { %1850 = vmatprep.subr.bf16.mxu0 %v1849_v39 }
 0x137   : > { %v417_v29 = vpop.f32.mrb[0].mxu0 }
 0x138   : > { %v421_v30 = vadd.f32 %v417_v29, %v350_v28  ;;  %v1469_v31 = vpop.f32.mrb[1].mxu0  ;;  %v797_v28 = vld [vmem:[#allocation7 + $0xf0] sm:$0xff]  ;;  %v798_v29 = vld [vmem:[#allocation7 + $0xf8] sm:$0xff] }
 0x139   : > { %v1268_v31 = vld [vmem:[%s2250_s9 + $0x10] sm:$0xff] }
 0x13a   : > { %2028 = vtanh.f32 %v421_v30  ;;  %v2416_v30 = vpack.c.bf16 %v798_v29, %v797_v28 }
 0x144   : > { %v2029_v32 = vpop.eup %2028 }
 0x145   : > { %v423_v34 = vsub.f32 %v2029_v32, %v349_v27 }
 0x147   : > { %v425_v35 = vmul.f32 %v2315_v33, %v423_v34 }
 0x149   : > { %v426_v36 = vadd.f32 %v425_v35, %v349_v27 }
 0x14b   : > { %1503 = vmatmul.mubr.f32.vlgmr.msra.gmra.mrb[0].mxu1 %v426_v36 }
 0x14c   : > { %1827 = vmatpush3.bf16.msra.mxu1 %v2259_v5  ;;  %1572 = vmatprep.mubr.msk.f32.mxu1 %vm2125_vm0, %v2126_v7  ;;  %v1877_v5 = vpack.c.bf16 %v685_v3, %v684_v2 }
 0x14d   : > { %1828 = vmatprep.subr.bf16.mxu1 %v2124_v4 }
 0x150   : > { %1830 = vmatpush3.bf16.msra.mxu1 %v2267_v8  ;;  %v784_v8 = vld [vmem:[#allocation7 + $0x88] sm:$0xff] }
 0x151   : > { %1831 = vmatprep.subr.bf16.mxu1 %v2124_v4  ;;  %v2388_v9 = vpack.c.bf16 %v784_v8, %v783_v6 }
 0x154   : > { %1833 = vmatpush3.bf16.msra.mxu1 %v2273_v11  ;;  %v786_v11 = vld [vmem:[#allocation7 + $0x98] sm:$0xff] }
 0x155   : > { %1834 = vmatprep.subr.bf16.mxu1 %v2124_v4  ;;  %v2392_v12 = vpack.c.bf16 %v786_v11, %v785_v10 }
 0x158   : > { %1836 = vmatpush3.bf16.msra.mxu1 %v2279_v14  ;;  %v788_v14 = vld [vmem:[#allocation7 + $0xa8] sm:$0xff] }
 0x159   : > { %1837 = vmatprep.subr.bf16.mxu1 %v2124_v4  ;;  %v2396_v15 = vpack.c.bf16 %v788_v14, %v787_v13 }
 0x15c   : > { %1839 = vmatpush3.bf16.msra.mxu1 %v2285_v17  ;;  %v790_v17 = vld [vmem:[#allocation7 + $0xb8] sm:$0xff] }
 0x15d   : > { %1840 = vmatprep.subr.bf16.mxu1 %v2124_v4  ;;  %v2400_v18 = vpack.c.bf16 %v790_v17, %v789_v16 }
 0x160   : > { %1842 = vmatpush3.bf16.msra.mxu1 %v1769_v20  ;;  %v792_v20 = vld [vmem:[#allocation7 + $0xc8] sm:$0xff] }
 0x161   : > { %1843 = vmatprep.subr.bf16.mxu1 %v2124_v4  ;;  %v2404_v21 = vpack.c.bf16 %v792_v20, %v791_v19 }
 0x164   : > { %1845 = vmatpush3.bf16.msra.mxu1 %v1772_v23  ;;  %v794_v23 = vld [vmem:[#allocation7 + $0xd8] sm:$0xff] }
 0x165   : > { %1846 = vmatprep.subr.bf16.mxu1 %v2124_v4  ;;  %v2408_v24 = vpack.c.bf16 %v794_v23, %v793_v22 }
 0x168   : > { %1848 = vmatpush3.bf16.msra.mxu1 %v1775_v26  ;;  %v796_v26 = vld [vmem:[#allocation7 + $0xe8] sm:$0xff] }
 0x169   : > { %1881 = vmatprep.subr.bf16.mxu1 %v2124_v4  ;;  %v2412_v27 = vpack.c.bf16 %v796_v26, %v795_v25 }
 0x21e   : > { %v496_v41 = vpop.f32.mrb[0].mxu1 }
 0x21f   : > { %v500_v42 = vadd.f32 %v1267_v40, %v496_v41  ;;  %v1504_v43 = vpop.f32.mrb[1].mxu1 }
 0x220   : > { %v1269_v43 = vld [vmem:[%s2250_s9 + $0x18] sm:$0xff]  ;;  %s1271_s9 = sld [smem:[#allocation4 + $0x1]] }
 0x221   : > { %2030 = vtanh.f32 %v500_v42  ;;  %v801_v42 = vld [vmem:[#allocation2 + $0x8] sm:$0xff] }
 0x226   : > { %v876_v57 = vstv %s1271_s9 }
 0x22b   : > { %v2031_v44 = vpop.eup %2030 }
 0x22c   : > { %v502_v45 = vsub.f32 %v2031_v44, %v426_v36 }
 0x22e   : > { %v503_v48 = vmul.f32 %v502_v45, %v2315_v33 }
 0x230   : > { %v2347_v49 = vadd.f32 %v503_v48, %v426_v36 }
 0x232   : > { %1538 = vmatmul.mubr.f32.vlgmr.msra.gmra.mrb[2].mxu0 %v2347_v49 }
 0x233   : > { %1852 = vmatpush3.bf16.msra.mxu0 %v1849_v39  ;;  %1607 = vmatprep.mubr.f32.mxu0 %v426_v36 }
 0x234   : > { %1854 = vmatprep.subr.bf16.mxu0 %v1853_v50 }
 0x237   : > { %1856 = vmatpush3.bf16.msra.mxu0 %v1853_v50 }
 0x238   : > { %1858 = vmatprep.subr.bf16.mxu0 %v1857_v53 }
 0x23b   : > { %1860 = vmatpush3.bf16.msra.mxu0 %v1857_v53 }
 0x23c   : > { %1862 = vmatprep.subr.bf16.mxu0 %v1861_v56 }
 0x23f   : > { %1864 = vmatpush3.bf16.msra.mxu0 %v1861_v56 }
 0x240   : > { %1866 = vmatprep.subr.bf16.mxu0 %v1865_v59 }
 0x243   : > { %1868 = vmatpush3.bf16.msra.mxu0 %v1865_v59 }
 0x244   : > { %1870 = vmatprep.subr.bf16.mxu0 %v1869_v62 }
 0x247   : > { %1872 = vmatpush3.bf16.msra.mxu0 %v1869_v62 }
 0x248   : > { %1874 = vmatprep.subr.bf16.mxu0 %v1873_v1 }
 0x24b   : > { %1876 = vmatpush3.bf16.msra.mxu0 %v1873_v1 }
 0x24c   : > { %1878 = vmatprep.subr.bf16.mxu0 %v1877_v5 }
 0x24f   : > { %1880 = vmatpush3.bf16.msra.mxu0 %v1877_v5 }
 0x250   : > { %1905 = vmatprep.subr.bf16.mxu0 %v2124_v4 }
 0x252   : > { %1608 = vmatmul.mubr.f32.vlgmr.msra.gmra.mrb[4].mxu0 %v2347_v49 }
 0x253   : > { %1907 = vmatpush3.bf16.msra.mxu0 %v2388_v9 }
 0x254   : > { %1908 = vmatprep.subr.bf16.mxu0 %v2124_v4 }
 0x257   : > { %1910 = vmatpush3.bf16.msra.mxu0 %v2392_v12 }
 0x258   : > { %1911 = vmatprep.subr.bf16.mxu0 %v2124_v4 }
 0x25b   : > { %1913 = vmatpush3.bf16.msra.mxu0 %v2396_v15 }
 0x25c   : > { %1914 = vmatprep.subr.bf16.mxu0 %v2124_v4 }
 0x25f   : > { %1916 = vmatpush3.bf16.msra.mxu0 %v2400_v18 }
 0x260   : > { %1917 = vmatprep.subr.bf16.mxu0 %v2124_v4 }
 0x263   : > { %1919 = vmatpush3.bf16.msra.mxu0 %v2404_v21 }
 0x264   : > { %1920 = vmatprep.subr.bf16.mxu0 %v2124_v4 }
 0x267   : > { %1922 = vmatpush3.bf16.msra.mxu0 %v2408_v24 }
 0x268   : > { %1923 = vmatprep.subr.bf16.mxu0 %v2124_v4 }
 0x26b   : > { %1925 = vmatpush3.bf16.msra.mxu0 %v2412_v27 }
 0x26c   : > { %1926 = vmatprep.subr.bf16.mxu0 %v2124_v4 }
 0x26f   : > { %1928 = vmatpush3.bf16.msra.mxu0 %v2416_v30 }
 0x270   : > { %1953 = vmatprep.subr.bf16.mxu0 %v2124_v4 }
 0x305   : > { %v575_v32 = vpop.f32.mrb[2].mxu0 }
 0x306   : > { %v579_v34 = vadd.f32 %v1268_v31, %v575_v32  ;;  %v1539_v35 = vpop.f32.mrb[3].mxu0 }
 0x308   : > { %2032 = vtanh.f32 %v579_v34 }
 0x312   : > { %v2033_v36 = vpop.eup %2032 }
 0x313   : > { %v581_v37 = vsub.f32 %v2033_v36, %v2347_v49 }
 0x315   : > { %v582_v38 = vmul.f32 %v581_v37, %v2315_v33 }
 0x317   : > { %v583_v39 = vadd.f32 %v582_v38, %v2347_v49 }
 0x319   : > { %1573 = vmatmul.mubr.f32.vlgmr.msra.gmra.mrb[2].mxu1 %v583_v39  ;;  %1610 = vmatprep.mubr.f32.mxu0 %v583_v39 }
 0x31a   : > { %1883 = vmatpush3.bf16.msra.mxu1 %v2388_v9  ;;  %1645 = vmatprep.mubr.msk.f32.mxu1 %vm2125_vm0, %v2126_v7 }
 0x31b   : > { %1884 = vmatprep.subr.bf16.mxu1 %v2124_v4 }
 0x31e   : > { %1886 = vmatpush3.bf16.msra.mxu1 %v2392_v12 }
 0x31f   : > { %1887 = vmatprep.subr.bf16.mxu1 %v2124_v4 }
 0x322   : > { %1889 = vmatpush3.bf16.msra.mxu1 %v2396_v15 }
 0x323   : > { %1890 = vmatprep.subr.bf16.mxu1 %v2124_v4 }
 0x325   : > { %v2432_v40 = vpop.f32.mrb[4].mxu0 }
 0x326   : > { %v759_v41 = vpop.f32.mrb[5].mxu0  ;;  %1892 = vmatpush3.bf16.msra.mxu1 %v2400_v18  ;;  %v765_v61 = vadd.f32 %v2432_v40, %v1270_v51 }
 0x327   : > { %1893 = vmatprep.subr.bf16.mxu1 %v2124_v4  ;;  %v760_v52 = vadd.f32 %v1270_v51, %v759_v41 }
 0x32a   : > { %1895 = vmatpush3.bf16.msra.mxu1 %v2404_v21 }
 0x32b   : > { %1896 = vmatprep.subr.bf16.mxu1 %v2124_v4 }
 0x32e   : > { %1898 = vmatpush3.bf16.msra.mxu1 %v2408_v24 }
 0x32f   : > { %1899 = vmatprep.subr.bf16.mxu1 %v2124_v4 }
 0x332   : > { %1901 = vmatpush3.bf16.msra.mxu1 %v2412_v27 }
 0x333   : > { %1902 = vmatprep.subr.bf16.mxu1 %v2124_v4 }
 0x336   : > { %1904 = vmatpush3.bf16.msra.mxu1 %v2416_v30 }
 0x337   : > { %1929 = vmatprep.subr.bf16.mxu1 %v2124_v4 }
 0x339   : > { %1646 = vmatmul.mubr.f32.vlgmr.msra.gmra.mrb[4].mxu1 %v801_v42 }
 0x33a   : > { %1931 = vmatpush3.bf16.msra.mxu1 %v2388_v9  ;;  %1715 = vmatprep.mubr.msk.f32.mxu1 %vm2125_vm0, %v2126_v7 }
 0x33b   : > { %1932 = vmatprep.subr.bf16.mxu1 %v2124_v4 }
 0x33e   : > { %1934 = vmatpush3.bf16.msra.mxu1 %v2392_v12 }
 0x33f   : > { %1935 = vmatprep.subr.bf16.mxu1 %v2124_v4 }
 0x342   : > { %1937 = vmatpush3.bf16.msra.mxu1 %v2396_v15 }
 0x343   : > { %1938 = vmatprep.subr.bf16.mxu1 %v2124_v4 }
 0x346   : > { %1940 = vmatpush3.bf16.msra.mxu1 %v2400_v18 }
 0x347   : > { %1941 = vmatprep.subr.bf16.mxu1 %v2124_v4 }
 0x34a   : > { %1943 = vmatpush3.bf16.msra.mxu1 %v2404_v21 }
 0x34b   : > { %1944 = vmatprep.subr.bf16.mxu1 %v2124_v4 }
 0x34e   : > { %1946 = vmatpush3.bf16.msra.mxu1 %v2408_v24 }
 0x34f   : > { %1947 = vmatprep.subr.bf16.mxu1 %v2124_v4 }
 0x352   : > { %1949 = vmatpush3.bf16.msra.mxu1 %v2412_v27 }
 0x353   : > { %1950 = vmatprep.subr.bf16.mxu1 %v2124_v4 }
 0x356   : > { %1952 = vmatpush3.bf16.msra.mxu1 %v2416_v30 }
 0x3ec   : > { %v654_v44 = vpop.f32.mrb[2].mxu1 }
 0x3ed   : > { %v658_v45 = vadd.f32 %v1269_v43, %v654_v44  ;;  %v1574_v46 = vpop.f32.mrb[3].mxu1 }
 0x3ef   : > { %2034 = vtanh.f32 %v658_v45 }
 0x3f9   : > { %v2035_v47 = vpop.eup %2034 }
 0x3fa   : > { %v660_v48 = vsub.f32 %v2035_v47, %v583_v39 }
 0x3fc   : > { %v661_v49 = vmul.f32 %v660_v48, %v2315_v33 }
 0x3fe   : > { %v662_v50 = vadd.f32 %v661_v49, %v583_v39 }
 0x400   : > { %665 = vst [vmem:[#allocation2] sm:$0xff] %v662_v50  ;;  %1611 = vmatmul.mubr.f32.gmra.mrb[6].mxu0 %v662_v50 }
 0x401   : > { %1680 = vmatprep.mubr.msk.f32.mxu0 %vm2125_vm0, %v2126_v7 }
 0x407   : > { %v1119_v22 = vld [vmem:[#allocation2] sm:$0xff] (!%p1275_p4) }
 0x408   : > { %1121 = vst [vmem:[%s2512_s6] sm:$0xff] (!%p1275_p4), %v1119_v22 }
 0x40c   : > { %v869_v53 = vpop.f32.mrb[4].mxu1 }
 0x40d   : > { %v873_v54 = vadd.f32 %v869_v53, %v760_v52  ;;  %v1647_v55 = vpop.f32.mrb[5].mxu1 }
 0x40f   : > { %2036 = vtanh.f32 %v873_v54 }
 0x419   : > { %v2037_v56 = vpop.eup %2036 }
 0x41a   : > { %v875_v33 = vsub.f32 %v2037_v56, %v801_v42 }
 0x41c   : > { %v877_v58 = vmul.f32 %v876_v57, %v875_v33 }
 0x41e   : > { %v878_v59 = vadd.f32 %v877_v58, %v801_v42 }
 0x420   : > { %1681 = vmatmul.mubr.f32.vlgmr.msra.gmra.mrb[8].mxu0 %v878_v59  ;;  %879 = vst [vmem:[%s2255_s12] sm:$0xff] %v878_v59 }
 0x421   : > { %1955 = vmatpush3.bf16.msra.mxu0 %v2388_v9  ;;  %1750 = vmatprep.mubr.msk.f32.mxu0 %vm2125_vm0, %v2126_v7 }
 0x422   : > { %1956 = vmatprep.subr.bf16.mxu0 %v2124_v4 }
 0x425   : > { %1958 = vmatpush3.bf16.msra.mxu0 %v2392_v12 }
 0x426   : > { %1959 = vmatprep.subr.bf16.mxu0 %v2124_v4 }
 0x429   : > { %1961 = vmatpush3.bf16.msra.mxu0 %v2396_v15 }
 0x42a   : > { %1962 = vmatprep.subr.bf16.mxu0 %v2124_v4 }
 0x42d   : > { %1964 = vmatpush3.bf16.msra.mxu0 %v2400_v18 }
 0x42e   : > { %1965 = vmatprep.subr.bf16.mxu0 %v2124_v4 }
 0x431   : > { %1967 = vmatpush3.bf16.msra.mxu0 %v2404_v21 }
 0x432   : > { %1968 = vmatprep.subr.bf16.mxu0 %v2124_v4 }
 0x435   : > { %1970 = vmatpush3.bf16.msra.mxu0 %v2408_v24 }
 0x436   : > { %1971 = vmatprep.subr.bf16.mxu0 %v2124_v4 }
 0x439   : > { %1973 = vmatpush3.bf16.msra.mxu0 %v2412_v27 }
 0x43a   : > { %1974 = vmatprep.subr.bf16.mxu0 %v2124_v4 }
 0x43d   : > { %1976 = vmatpush3.bf16.msra.mxu0 %v2416_v30 }
 0x4d3   : > { %v1612_v7 = vpop.f32.mrb[6].mxu0 }
 0x4d4   : > { %v769_v60 = vpop.f32.mrb[7].mxu0  ;;  %v775_v14 = vadd.f32 %v1612_v7, %v1270_v51 }
 0x4d5   : > { %v770_v6 = vadd.f32 %v1270_v51, %v769_v60 }
 0x4f3   : > { %v947_v62 = vpop.f32.mrb[8].mxu0 }
 0x4f4   : > { %v951_v63 = vadd.f32 %v947_v62, %v765_v61  ;;  %v1682_v0 = vpop.f32.mrb[9].mxu0 }
 0x4f6   : > { %2038 = vtanh.f32 %v951_v63 }
 0x500   : > { %v2039_v1 = vpop.eup %2038 }
 0x501   : > { %v953_v2 = vsub.f32 %v2039_v1, %v878_v59 }
 0x503   : > { %v954_v3 = vmul.f32 %v953_v2, %v876_v57 }
 0x505   : > { %v955_v5 = vadd.f32 %v954_v3, %v878_v59 }
 0x507   : > { %1272 = vst [vmem:[%s2255_s12 + $0x8] sm:$0xff] %v955_v5  ;;  %1716 = vmatmul.mubr.f32.vlgmr.msra.gmra.mrb[6].mxu1 %v955_v5 }
 0x5da   : > { %v1025_v8 = vpop.f32.mrb[6].mxu1 }
 0x5db   : > { %v1029_v4 = vadd.f32 %v1025_v8, %v770_v6  ;;  %v1717_v9 = vpop.f32.mrb[7].mxu1 }
 0x5dd   : > { %2040 = vtanh.f32 %v1029_v4 }
 0x5e7   : > { %v2041_v10 = vpop.eup %2040 }
 0x5e8   : > { %v1031_v11 = vsub.f32 %v2041_v10, %v955_v5 }
 0x5ea   : > { %v1032_v12 = vmul.f32 %v1031_v11, %v876_v57 }
 0x5ec   : > { %v1033_v13 = vadd.f32 %v1032_v12, %v955_v5 }
 0x5ee   : > { %1273 = vst [vmem:[%s2255_s12 + $0x10] sm:$0xff] %v1033_v13  ;;  %1751 = vmatmul.mubr.f32.vlgmr.msra.gmra.mrb[10].mxu0 %v1033_v13 }
 0x6c1   : > { %v1103_v15 = vpop.f32.mrb[10].mxu0 }
 0x6c2   : > { %v1107_v16 = vadd.f32 %v1103_v15, %v775_v14  ;;  %v1752_v17 = vpop.f32.mrb[11].mxu0 }
 0x6c4   : > { %2042 = vtanh.f32 %v1107_v16 }
 0x6ce   : > { %v2043_v18 = vpop.eup %2042 }
 0x6cf   : > { %v1109_v19 = vsub.f32 %v2043_v18, %v1033_v13  ;;  %1118 = sbr.rel (%p1275_p4) target bundleno = 1758 (0x6de), region = 56 }
 0x6d1   : > { %v1110_v20 = vmul.f32 %v1109_v19, %v876_v57 }
 0x6d3   : > { %v1111_v21 = vadd.f32 %v1110_v20, %v1033_v13 }
 0x6d5   : > { %1274 = vst [vmem:[%s2255_s12 + $0x18] sm:$0xff] %v1111_v21  ;;  %1114 = vst [vmem:[#allocation2 + $0x8] sm:$0xff] %v1111_v21 }
 0x6dc   : > { %v1120_v23 = vld [vmem:[#allocation2 + $0x8] sm:$0xff] }
 0x6dd   : > { %1122 = vst [vmem:[%s2512_s6 + $0x8] sm:$0xff] %v1120_v23 }
 0x6de PF: > { %s19_s23 = sadd.s32 1, %s2117_s23   ;;  %s2516_s21 = smov %s2113_s22 }
 0x6df   : > { %p16_p6 = scmp.ge.s32.totalorder %s19_s23, 4   ;;  %s2517_s22 = smov %s2519_s25 }
 0x6e1   :  { %18 = sbr.rel (!%p16_p6) target bundleno = 3 (0x3), region = 111 }
 0x6e8   :  { %1165 = vsyncpa [#allocation5], 1 }
 0x6e9   :  { %1167 = vsyncpa [#allocation5 + $0x1], 1 }
 0x6ea   :  { %1168 = vsyncpa [#allocation6], 1 }
 0x6eb   :  { %1170 = vsyncpa [#allocation6 + $0x1], 1 }

</bundles_post_ra>
